<compile_context>
chip_gen: v6e
topology: v6e:2x2x1
jax: 0.10.0
libtpu: 0.0.40
codegen_flags: <defaults>
</compile_context>

<pallas_src>
import functools

import jax
import jax.numpy as jnp
from jax import lax
from jax.experimental import pallas as pl
from jax.experimental.pallas import tpu as pltpu


def _fused_pool_linear_kernel(x_ref, m_ref, bias_ref, o_ref):
    # x_ref: (TB, HW), m_ref: (HW, HW), bias_ref: (1, HW), o_ref: (TB, HW)
    y = jnp.dot(x_ref[...], m_ref[...], preferred_element_type=jnp.float32)
    o_ref[...] = (y + bias_ref[...]).astype(o_ref.dtype)


def _round_up(x, m):
    return ((x + m - 1) // m) * m


def _build_fused_weight(H, W, w_lin, pool_sizes):
    """Fold pools + residual + Linear into one (H*W, H*W) matrix.

    out[i, j] = sum_{m, w} x[m, w] * M[(m, w), (i, j)]  (+ bias[j])
    """
    wt = w_lin.T.astype(jnp.float32)                       # Linear: x @ W^T
    a_list, d_list = [], []
    for k in pool_sizes:
        p = k // 2
        ih = jnp.arange(H)
        band_h = (jnp.abs(ih[:, None] - ih[None, :]) <= p).astype(jnp.float32)
        a_list.append(band_h / band_h.sum(axis=1, keepdims=True))   # row-norm
        iw = jnp.arange(W)
        band_w = (jnp.abs(iw[:, None] - iw[None, :]) <= p).astype(jnp.float32)
        b_k = band_w / band_w.sum(axis=0, keepdims=True)            # col-norm
        d_list.append(b_k @ wt)                                     # fold Linear
    A = jnp.stack(a_list)                   # (P, H, H)  A[k, i, m]
    D = jnp.stack(d_list)                   # (P, W, W)  D[k, w, j]
    E = float(len(pool_sizes)) * wt         # residual: -P * x @ W^T
    m4 = (jnp.einsum("kim,kwj->mwij", A, D)
          - jnp.einsum("im,wj->mwij", jnp.eye(H, dtype=jnp.float32), E))
    return m4.reshape(H * W, H * W)


@functools.partial(jax.jit, static_argnames=("pool_sizes", "block_rows"))
def pooling_forward(x, w_lin, b_lin, pool_sizes=(5, 7, 9), block_rows=128):
    N, C, H, W = x.shape
    HW = H * W
    NC = N * C

    M = _build_fused_weight(H, W, w_lin, pool_sizes)            # (HW, HW)
    bias_full = jnp.tile(b_lin.astype(jnp.float32), H).reshape(1, HW)

    # Flatten each (H, W) slab to a lane-dense row of length H*W.
    x2 = x.reshape(NC, HW)

    # Batch TB slabs per grid step; keep TB a multiple of 8 (sublane tiling).
    TB = min(int(block_rows), _round_up(NC, 8))
    padded = _round_up(NC, TB)
    if padded != NC:
        x2 = jnp.pad(x2, ((0, padded - NC), (0, 0)))

    out = pl.pallas_call(
        _fused_pool_linear_kernel,
        out_shape=jax.ShapeDtypeStruct((padded, HW), x.dtype),
        grid=(padded // TB,),
        in_specs=[
            pl.BlockSpec((TB, HW), lambda i: (i, 0)),       # streamed x rows
            pl.BlockSpec((HW, HW), lambda i: (0, 0)),       # fused weight (resident)
            pl.BlockSpec((1, HW), lambda i: (0, 0)),        # tiled bias (resident)
        ],
        out_specs=pl.BlockSpec((TB, HW), lambda i: (i, 0)),
        compiler_params=pltpu.CompilerParams(
            dimension_semantics=("parallel",)),
    )(x2, M, bias_full)

    return out[:NC].reshape(N, C, H, W)


def _reference(x, w_lin, b_lin, pool_sizes=(5, 7, 9)):
    """Pure-JAX reference matching PyTorch semantics."""
    def avg_pool(x, k):
        p = k // 2
        pad = [(0, 0), (0, 0), (p, p), (p, p)]
        s = lax.reduce_window(x, 0.0, lax.add, (1, 1, k, k), (1, 1, 1, 1), pad)
        cnt = lax.reduce_window(jnp.ones_like(x), 0.0, lax.add,
                                (1, 1, k, k), (1, 1, 1, 1), pad)
        return s / cnt

    out = sum(avg_pool(x, k) - x for k in pool_sizes)
    return jnp.einsum("nchw,dw->nchd", out, w_lin) + b_lin


if __name__ == "__main__":
    key = jax.random.PRNGKey(0)
    N, C, H, W = 2, 4, 16, 16          # dim == W == 16
    dim = W

    kx, kw, kb = jax.random.split(key, 3)
    x = jax.random.normal(kx, (N, C, H, W), dtype=jnp.float32)
    bound = 1.0 / jnp.sqrt(dim)
    w_lin = jax.random.uniform(kw, (dim, dim), jnp.float32, -bound, bound)
    b_lin = jax.random.uniform(kb, (dim,), jnp.float32, -bound, bound)

    y = pooling_forward(x, w_lin, b_lin)
    jax.block_until_ready(y)

    y_ref = _reference(x, w_lin, b_lin)
    assert y.shape == (N, C, H, W)
    err = float(jnp.max(jnp.abs(y - y_ref)))
    assert jnp.allclose(y, y_ref, rtol=1e-3, atol=1e-3), err

    print("KERNEL_OK")
</pallas_src>

<mosaic_0001>
module attributes {stable_mosaic.version = 11 : i64} {
  func.func @_fused_pool_linear_kernel(%arg0: i32, %arg1: memref<8x256xf32, #tpu.memory_space<vmem>>, %arg2: memref<256x256xf32, #tpu.memory_space<vmem>>, %arg3: memref<1x256xf32, #tpu.memory_space<vmem>>, %arg4: memref<8x256xf32, #tpu.memory_space<vmem>>) attributes {dimension_semantics = [#tpu.dimension_semantics<parallel>], iteration_bounds = array<i64: 1>, scalar_prefetch = 0 : i64, scratch_operands = 0 : i64, tpu.core_type = #tpu.core_type<tc>, window_params = [{transform_indices = @transform_0, window_bounds = array<i64: 8, 256>}, {pipeline_mode = #tpu.pipeline_mode<synchronous>, transform_indices = @transform_1, window_bounds = array<i64: 256, 256>}, {pipeline_mode = #tpu.pipeline_mode<synchronous>, transform_indices = @transform_2, window_bounds = array<i64: 1, 256>}, {transform_indices = @transform_3, window_bounds = array<i64: 8, 256>}]} {
    %c0 = arith.constant 0 : index
    %c0_0 = arith.constant 0 : index
    %0 = vector.load %arg1[%c0, %c0_0] : memref<8x256xf32, #tpu.memory_space<vmem>>, vector<8x256xf32>
    %c0_1 = arith.constant 0 : index
    %c0_2 = arith.constant 0 : index
    %1 = vector.load %arg2[%c0_1, %c0_2] : memref<256x256xf32, #tpu.memory_space<vmem>>, vector<256x256xf32>
    %cst = arith.constant dense<0.000000e+00> : vector<8x256xf32>
    %2 = tpu.matmul %0, %1, %cst {dimension_numbers = #tpu.dot_dimension_numbers<[1], [0], [0], [1], [0, 0, 1, 1], [], []>} : vector<8x256xf32>, vector<256x256xf32>, vector<8x256xf32> -> vector<8x256xf32>
    %c0_3 = arith.constant 0 : index
    %c0_4 = arith.constant 0 : index
    %3 = vector.load %arg3[%c0_3, %c0_4] : memref<1x256xf32, #tpu.memory_space<vmem>>, vector<1x256xf32>
    %4 = vector.broadcast %3 : vector<1x256xf32> to vector<8x256xf32>
    %5 = arith.addf %2, %4 : vector<8x256xf32>
    %c0_5 = arith.constant 0 : index
    %c0_6 = arith.constant 0 : index
    %6 = vector.load %arg4[%c0_5, %c0_6] : memref<8x256xf32, #tpu.memory_space<vmem>>, vector<8x256xf32>
    tpu.vector_store %arg4[%c0_5, %c0_6], %5 {strides = array<i32>} : memref<8x256xf32, #tpu.memory_space<vmem>>, vector<8x256xf32>,
    return
  }
  func.func @transform_0(%arg0: i32) -> (i32, i32) {
    %c0_i32 = arith.constant 0 : i32
    %c0_i32_0 = arith.constant 0 : i32
    return %arg0, %c0_i32 : i32, i32
  }
  func.func @transform_1(%arg0: i32) -> (i32, i32) {
    %c0_i32 = arith.constant 0 : i32
    %c0_i32_0 = arith.constant 0 : i32
    %c0_i32_1 = arith.constant 0 : i32
    return %c0_i32, %c0_i32_0 : i32, i32
  }
  func.func @transform_2(%arg0: i32) -> (i32, i32) {
    %c0_i32 = arith.constant 0 : i32
    %c0_i32_0 = arith.constant 0 : i32
    %c0_i32_1 = arith.constant 0 : i32
    return %c0_i32, %c0_i32_0 : i32, i32
  }
  func.func @transform_3(%arg0: i32) -> (i32, i32) {
    %c0_i32 = arith.constant 0 : i32
    %c0_i32_0 = arith.constant 0 : i32
    return %arg0, %c0_i32 : i32, i32
  }
}

</mosaic_0001>

<bundles_post_ra>
// kernel: tile.8
= control target key start
LH: loop header
LB: loop body
LE: loop exit
PB: predicated region body
PF: predicated region fallthrough
CT: control target
= control target key end

     0   :  { %s28_s0 = inlined_call_operand.vmem [shape: f32[16], index: 0, kind: input, shape index: {}]   ;;  %s29_s1 = inlined_call_operand.vmem [shape: f32[16,16], index: 1, kind: output, shape index: {}]  }
   0x1   :  { %v4_v0 = vld [vmem:[%s28_s0] ss:$0 sm:$0xff] }
   0x2   :  { %5 = vst [vmem:[%s29_s1] sm:$0xff] %v4_v0  ;;  %8 = vst [vmem:[%s29_s1 + $0x8] sm:$0xff] %v4_v0 }

// kernel: tile.9
= control target key start
LH: loop header
LB: loop body
LE: loop exit
PB: predicated region body
PF: predicated region fallthrough
CT: control target
= control target key end

     0   :  { %s7_s6 = smov 3  ;;  %s21_s9 = smov 3  ;;  %vm4_vm0 = vcmask 130048   ;;  %vm11_vm1 = vcmask 1048448   ;;  %vm18_vm2 = vcmask 917248   ;;  %vm25_vm3 = vcmask 786048   ;;  %s131_s0 = inlined_call_operand.vmem [shape: f32[16,16], index: 0, kind: input, shape index: {}]   ;;  %s132_s1 = inlined_call_operand.vmem [shape: f32[1,256], index: 1, kind: output, shape index: {}]  }
   0x1   :  { %v69_v0 = vld [vmem:[%s131_s0 + $0x7] ss:$8 sm:%s7_s6]   ;;  %s84_s10 = smov 112   ;;  %v71_v1 = vld [vmem:[%s131_s0 + $0x5] ss:$8 sm:%s21_s9]   ;;  %s14_s13 = smov 3 }
   0x2   :  { %9 = vrot.lane.b32.xlu0 %v69_v0, %s84_s10  ;;  %s85_s14 = smov 80   ;;  %v70_v2 = vld [vmem:[%s131_s0 + $0x6] ss:$8 sm:%s14_s13]   ;;  %s28_s17 = smov 3  ;;  %vm32_vm4 = vcmask 654848   ;;  %vm39_vm5 = vcmask 523648  }
   0x3   :  { %23 = vrot.lane.b32.xlu1 %v71_v1, %s85_s14  ;;  %v72_v3 = vld [vmem:[%s131_s0 + $0x4] ss:$8 sm:%s28_s17]   ;;  %s35_s20 = smov 3  ;;  %s42_s21 = smov 3  ;;  %vm46_vm6 = vcmask 392448   ;;  %vm53_vm7 = vcmask 261248  }
   0x4   :  { %s86_s22 = smov 96   ;;  %s87_s23 = smov 64   ;;  %v73_v4 = vld [vmem:[%s131_s0 + $0x3] ss:$8 sm:%s35_s20]   ;;  %v74_v5 = vld [vmem:[%s131_s0 + $0x2] ss:$8 sm:%s42_s21]  }
   0x5   :  { %s2_s26 = smov 3  ;;  %s49_s29 = smov 3 }
   0x6   :  { %16 = vrot.lane.b32.xlu0 %v70_v2, %s86_s22  ;;  %v3_v6 = vld [vmem:[%s131_s0] ss:$8 sm:%s2_s26]   ;;  %s88_s3 = smov 48   ;;  %s89_s4 = smov 32  }
   0x7   :  { %30 = vrot.lane.b32.xlu1 %v72_v3, %s87_s23  ;;  %5 = vst.msk [vmem:[#allocation0] ss:$8 sm:$0x3] %vm4_vm0, %v3_v6   ;;  %v75_v7 = vld [vmem:[%s131_s0 + $0x1] ss:$8 sm:%s49_s29]   ;;  %s90_s0 = smov 16  }
   0xa   :  { %37 = vrot.lane.b32.xlu0 %v73_v4, %s88_s3 }
   0xb   :  { %44 = vrot.lane.b32.xlu1 %v74_v5, %s89_s4 }
   0xe   :  { %51 = vrot.lane.b32.xlu0 %v75_v7, %s90_s0 }
  0x74   :  { %v10_v8 = vpop.permute.xlu0 %9  }
  0x75   :  { %12 = vst.msk [vmem:[#allocation0] ss:$8 sm:$0x3] %vm11_vm1, %v10_v8   ;;  %v24_v9 = vpop.permute.xlu1 %23  }
  0x78   :  { %v17_v10 = vpop.permute.xlu0 %16  }
  0x79   :  { %19 = vst.msk [vmem:[#allocation0] ss:$8 sm:$0x3] %vm18_vm2, %v17_v10   ;;  %v31_v11 = vpop.permute.xlu1 %30  }
  0x7a   :  { %26 = vst.msk [vmem:[#allocation0] ss:$8 sm:$0x3] %vm25_vm3, %v24_v9  }
  0x7b   :  { %33 = vst.msk [vmem:[#allocation0] ss:$8 sm:$0x3] %vm32_vm4, %v31_v11  }
  0x7c   :  { %v38_v12 = vpop.permute.xlu0 %37  }
  0x7d   :  { %40 = vst.msk [vmem:[#allocation0] ss:$8 sm:$0x3] %vm39_vm5, %v38_v12   ;;  %v45_v13 = vpop.permute.xlu1 %44  }
  0x7e   :  { %47 = vst.msk [vmem:[#allocation0] ss:$8 sm:$0x3] %vm46_vm6, %v45_v13  }
  0x80   :  { %v52_v14 = vpop.permute.xlu0 %51  }
  0x81   :  { %54 = vst.msk [vmem:[#allocation0] ss:$8 sm:$0x3] %vm53_vm7, %v52_v14  }
  0x88   :  { %v59_v15 = vld [vmem:[#allocation0] sm:$0x1]  ;;  %v64_v16 = vld [vmem:[#allocation0 + $0x8] sm:$0x1] }
  0x89   :  { %62 = vst [vmem:[%s132_s1] sm:$0x1] %v59_v15  ;;  %76 = vst [vmem:[%s132_s1 + $0x1] sm:$0x1] %v64_v16 }

// kernel: pooling_forward.1
= control target key start
LH: loop header
LB: loop body
LE: loop exit
PB: predicated region body
PF: predicated region fallthrough
CT: control target
= control target key end

     0   :  { %s396_s1 = inlined_call_operand.vmem [shape: f32[256,256], index: 1, kind: input, shape index: {}]   ;;  %s397_s0 = inlined_call_operand.vmem [shape: f32[8,256], index: 0, kind: input, shape index: {}]   ;;  %s398_s2 = inlined_call_operand.vmem [shape: f32[1,256], index: 2, kind: input, shape index: {}]   ;;  %s399_s3 = inlined_call_operand.vmem [shape: f32[8,256], index: 3, kind: output, shape index: {}]  }
   0x1   :  { %v47_v0 = vld [vmem:[%s396_s1 + $0xf8] sm:$0xff]  ;;  %v46_v1 = vld [vmem:[%s396_s1 + $0xf0] sm:$0xff]  ;;  %v45_v2 = vld [vmem:[%s396_s1 + $0xe8] sm:$0xff] }
   0x2   :  { %92 = vmatprep.subr.mxu0 %v47_v0  ;;  %v44_v3 = vld [vmem:[%s396_s1 + $0xe0] sm:$0xff]  ;;  %v43_v4 = vld [vmem:[%s396_s1 + $0xd8] sm:$0xff]  ;;  %v42_v5 = vld [vmem:[%s396_s1 + $0xd0] sm:$0xff] }
   0x3   :  { %93 = vmatpush1.msra.mxu0 %v46_v1  ;;  %v41_v6 = vld [vmem:[%s396_s1 + $0xc8] sm:$0xff]  ;;  %v40_v7 = vld [vmem:[%s396_s1 + $0xc0] sm:$0xff]  ;;  %v39_v8 = vld [vmem:[%s396_s1 + $0xb8] sm:$0xff] }
   0x4   :  { %94 = vmatprep.subr.mxu0 %v45_v2  ;;  %v38_v9 = vld [vmem:[%s396_s1 + $0xb0] sm:$0xff]  ;;  %v37_v10 = vld [vmem:[%s396_s1 + $0xa8] sm:$0xff]  ;;  %v36_v11 = vld [vmem:[%s396_s1 + $0xa0] sm:$0xff]  ;;  %v82_v2 = vlaneseq }
   0x5   :  { %95 = vmatpush1.msra.mxu0 %v44_v3  ;;  %v35_v12 = vld [vmem:[%s396_s1 + $0x98] sm:$0xff]  ;;  %v34_v13 = vld [vmem:[%s396_s1 + $0x90] sm:$0xff]  ;;  %v33_v14 = vld [vmem:[%s396_s1 + $0x88] sm:$0xff] }
   0x6   :  { %96 = vmatprep.subr.mxu0 %v43_v4  ;;  %v32_v15 = vld [vmem:[%s396_s1 + $0x80] sm:$0xff]  ;;  %v31_v16 = vld [vmem:[%s396_s1 + $0x78] sm:$0xff]  ;;  %v30_v17 = vld [vmem:[%s396_s1 + $0x70] sm:$0xff]  ;;  %v83_v3 = vshrl.u32 %v82_v2, 7 }
   0x7   :  { %97 = vmatpush1.msra.mxu0 %v42_v5  ;;  %v29_v18 = vld [vmem:[%s396_s1 + $0x68] sm:$0xff]  ;;  %v28_v19 = vld [vmem:[%s396_s1 + $0x60] sm:$0xff]  ;;  %v27_v20 = vld [vmem:[%s396_s1 + $0x58] sm:$0xff] }
   0x8   :  { %98 = vmatprep.subr.mxu0 %v41_v6  ;;  %v26_v21 = vld [vmem:[%s396_s1 + $0x50] sm:$0xff]  ;;  %v25_v22 = vld [vmem:[%s396_s1 + $0x48] sm:$0xff]  ;;  %v24_v23 = vld [vmem:[%s396_s1 + $0x40] sm:$0xff]  ;;  %v84_v4 = vsub.s32 0, %v83_v3  ;;  %v88_v6 = vsub.s32 1, %v83_v3 }
   0x9   :  { %99 = vmatpush1.msra.mxu0 %v40_v7  ;;  %v15_v24 = vld [vmem:[%s397_s0 + $0x8] sm:$0xff]  ;;  %v23_v25 = vld [vmem:[%s396_s1 + $0x38] sm:$0xff]  ;;  %v22_v26 = vld [vmem:[%s396_s1 + $0x30] sm:$0xff] }
   0xa   :  { %100 = vmatprep.subr.mxu0 %v39_v8  ;;  %156 = vmatprep.mubr.f32.mxu0 %v15_v24  ;;  %v21_v27 = vld [vmem:[%s396_s1 + $0x28] sm:$0xff]  ;;  %v20_v28 = vld [vmem:[%s396_s1 + $0x20] sm:$0xff]  ;;  %v19_v29 = vld [vmem:[%s396_s1 + $0x18] sm:$0xff] }
   0xb   :  { %101 = vmatpush1.msra.mxu0 %v38_v9  ;;  %v18_v30 = vld [vmem:[%s396_s1 + $0x10] sm:$0xff]  ;;  %v17_v31 = vld [vmem:[%s396_s1 + $0x8] sm:$0xff]  ;;  %v16_v32 = vld [vmem:[%s396_s1] sm:$0xff] }
   0xc   :  { %102 = vmatprep.subr.mxu0 %v37_v10  ;;  %v79_v33 = vld [vmem:[%s396_s1 + $0x1f8] sm:$0xff]  ;;  %v78_v34 = vld [vmem:[%s396_s1 + $0x1f0] sm:$0xff]  ;;  %v77_v35 = vld [vmem:[%s396_s1 + $0x1e8] sm:$0xff] }
   0xd   :  { %103 = vmatpush1.msra.mxu0 %v36_v11  ;;  %v76_v36 = vld [vmem:[%s396_s1 + $0x1e0] sm:$0xff]  ;;  %v75_v37 = vld [vmem:[%s396_s1 + $0x1d8] sm:$0xff]  ;;  %v74_v38 = vld [vmem:[%s396_s1 + $0x1d0] sm:$0xff] }
   0xe   :  { %104 = vmatprep.subr.mxu0 %v35_v12  ;;  %v73_v39 = vld [vmem:[%s396_s1 + $0x1c8] sm:$0xff]  ;;  %v72_v40 = vld [vmem:[%s396_s1 + $0x1c0] sm:$0xff]  ;;  %v71_v41 = vld [vmem:[%s396_s1 + $0x1b8] sm:$0xff] }
   0xf   :  { %105 = vmatpush1.msra.mxu0 %v34_v13  ;;  %v70_v42 = vld [vmem:[%s396_s1 + $0x1b0] sm:$0xff]  ;;  %v69_v43 = vld [vmem:[%s396_s1 + $0x1a8] sm:$0xff]  ;;  %v68_v44 = vld [vmem:[%s396_s1 + $0x1a0] sm:$0xff] }
  0x10   :  { %106 = vmatprep.subr.mxu0 %v33_v14  ;;  %v67_v45 = vld [vmem:[%s396_s1 + $0x198] sm:$0xff]  ;;  %v66_v46 = vld [vmem:[%s396_s1 + $0x190] sm:$0xff]  ;;  %v65_v47 = vld [vmem:[%s396_s1 + $0x188] sm:$0xff] }
  0x11   :  { %107 = vmatpush1.msra.mxu0 %v32_v15  ;;  %v64_v48 = vld [vmem:[%s396_s1 + $0x180] sm:$0xff]  ;;  %v63_v49 = vld [vmem:[%s396_s1 + $0x178] sm:$0xff]  ;;  %v62_v50 = vld [vmem:[%s396_s1 + $0x170] sm:$0xff] }
  0x12   :  { %108 = vmatprep.subr.mxu0 %v31_v16  ;;  %v61_v51 = vld [vmem:[%s396_s1 + $0x168] sm:$0xff]  ;;  %v60_v52 = vld [vmem:[%s396_s1 + $0x160] sm:$0xff]  ;;  %v59_v53 = vld [vmem:[%s396_s1 + $0x158] sm:$0xff] }
  0x13   :  { %109 = vmatpush1.msra.mxu0 %v30_v17  ;;  %v58_v54 = vld [vmem:[%s396_s1 + $0x150] sm:$0xff]  ;;  %v57_v55 = vld [vmem:[%s396_s1 + $0x148] sm:$0xff]  ;;  %v56_v56 = vld [vmem:[%s396_s1 + $0x140] sm:$0xff] }
  0x14   :  { %110 = vmatprep.subr.mxu0 %v29_v18  ;;  %v55_v57 = vld [vmem:[%s396_s1 + $0x138] sm:$0xff]  ;;  %v54_v58 = vld [vmem:[%s396_s1 + $0x130] sm:$0xff]  ;;  %v53_v59 = vld [vmem:[%s396_s1 + $0x128] sm:$0xff] }
  0x15   :  { %111 = vmatpush1.msra.mxu0 %v28_v19  ;;  %v52_v60 = vld [vmem:[%s396_s1 + $0x120] sm:$0xff]  ;;  %v51_v61 = vld [vmem:[%s396_s1 + $0x118] sm:$0xff]  ;;  %v50_v62 = vld [vmem:[%s396_s1 + $0x110] sm:$0xff] }
  0x16   :  { %112 = vmatprep.subr.mxu0 %v27_v20  ;;  %v49_v63 = vld [vmem:[%s396_s1 + $0x108] sm:$0xff]  ;;  %v48_v0 = vld [vmem:[%s396_s1 + $0x100] sm:$0xff] }
  0x17   :  { %113 = vmatpush1.msra.mxu0 %v26_v21  ;;  %v14_v1 = vld [vmem:[%s397_s0] sm:$0xff] }
  0x18   :  { %114 = vmatprep.subr.mxu0 %v25_v22  ;;  %v80_v5 = vld [vmem:[%s398_s2] sm:$0x3] }
  0x19   :  { %115 = vmatpush1.msra.mxu0 %v24_v23  ;;  %v85_v7 = vrot.slane %v80_v5, %v84_v4  ;;  %v89_v8 = vrot.slane %v80_v5, %v88_v6 }
  0x1a   :  { %116 = vmatprep.subr.mxu0 %v23_v25 }
  0x1b   :  { %117 = vmatpush1.msra.mxu0 %v22_v26 }
  0x1c   :  { %118 = vmatprep.subr.mxu0 %v21_v27 }
  0x1d   :  { %119 = vmatpush1.msra.mxu0 %v20_v28 }
  0x1e   :  { %120 = vmatprep.subr.mxu0 %v19_v29 }
  0x1f   :  { %121 = vmatpush1.msra.mxu0 %v18_v30 }
  0x20   :  { %122 = vmatprep.subr.mxu0 %v17_v31 }
  0x21   :  { %123 = vmatpush1.msra.mxu0 %v16_v32 }
  0x22   :  { %124 = vmatprep.subr.mxu0 %v79_v33 }
  0x23   :  { %125 = vmatpush2.msra.mxu0 %v78_v34 }
  0x24   :  { %126 = vmatprep.subr.mxu0 %v77_v35 }
  0x25   :  { %127 = vmatpush2.msra.mxu0 %v76_v36 }
  0x26   :  { %128 = vmatprep.subr.mxu0 %v75_v37 }
  0x27   :  { %129 = vmatpush2.msra.mxu0 %v74_v38 }
  0x28   :  { %130 = vmatprep.subr.mxu0 %v73_v39 }
  0x29   :  { %131 = vmatpush2.msra.mxu0 %v72_v40 }
  0x2a   :  { %132 = vmatprep.subr.mxu0 %v71_v41 }
  0x2b   :  { %133 = vmatpush2.msra.mxu0 %v70_v42 }
  0x2c   :  { %134 = vmatprep.subr.mxu0 %v69_v43 }
  0x2d   :  { %135 = vmatpush2.msra.mxu0 %v68_v44 }
  0x2e   :  { %136 = vmatprep.subr.mxu0 %v67_v45 }
  0x2f   :  { %137 = vmatpush2.msra.mxu0 %v66_v46 }
  0x30   :  { %138 = vmatprep.subr.mxu0 %v65_v47 }
  0x31   :  { %139 = vmatpush2.msra.mxu0 %v64_v48 }
  0x32   :  { %140 = vmatprep.subr.mxu0 %v63_v49 }
  0x33   :  { %141 = vmatpush2.msra.mxu0 %v62_v50 }
  0x34   :  { %142 = vmatprep.subr.mxu0 %v61_v51 }
  0x35   :  { %143 = vmatpush2.msra.mxu0 %v60_v52 }
  0x36   :  { %144 = vmatprep.subr.mxu0 %v59_v53 }
  0x37   :  { %145 = vmatpush2.msra.mxu0 %v58_v54 }
  0x38   :  { %146 = vmatprep.subr.mxu0 %v57_v55 }
  0x39   :  { %147 = vmatpush2.msra.mxu0 %v56_v56 }
  0x3a   :  { %148 = vmatprep.subr.mxu0 %v55_v57 }
  0x3b   :  { %149 = vmatpush2.msra.mxu0 %v54_v58 }
  0x3c   :  { %150 = vmatprep.subr.mxu0 %v53_v59 }
  0x3d   :  { %151 = vmatpush2.msra.mxu0 %v52_v60 }
  0x3e   :  { %152 = vmatprep.subr.mxu0 %v51_v61 }
  0x3f   :  { %153 = vmatpush2.msra.mxu0 %v50_v62 }
  0x40   :  { %154 = vmatprep.subr.mxu0 %v49_v63 }
  0x41   :  { %155 = vmatpush2.msra.mxu0 %v48_v0 }
  0x42   :  { %157 = vmatmul.mubr.f32.vlgmr.msra.gmra.mxu0 %v14_v1 }
 0x102   :  { %v158_v9 = vpop.f32.mrf.mxu0 }
 0x103   :  { %v159_v10 = vadd.f32 %v158_v9, %v85_v7 }
 0x104   :  { %v160_v11 = vpop.f32.mrf.mxu0 }
 0x105   :  { %163 = vst [vmem:[%s399_s3] sm:$0xff] %v159_v10  ;;  %v161_v12 = vadd.f32 %v160_v11, %v89_v8 }
 0x107   :  { %164 = vst [vmem:[%s399_s3 + $0x8] sm:$0xff] %v161_v12 }

</bundles_post_ra>
